<compile_context>
chip_gen: v7x
topology: tpu7x:2x2x1
jax: 0.10.0
libtpu: 0.0.40
codegen_flags: <defaults>
</compile_context>

<pallas_src>
import functools
import math

import jax
import jax.numpy as jnp
from jax.experimental import pallas as pl
from jax.experimental.pallas import tpu as pltpu


# ------------------------------ shared helpers ------------------------------ #

def _layernorm(x, gamma, beta, eps=1e-12):
    x = x.astype(jnp.float32)
    mu = jnp.mean(x, axis=-1, keepdims=True)
    xc = x - mu
    var = jnp.mean(xc * xc, axis=-1, keepdims=True)
    inv = jax.lax.rsqrt(var + eps)
    return xc * inv * gamma + beta


def _full_spec(shape):
    """BlockSpec covering the full array (constant block index)."""
    return pl.BlockSpec(shape, lambda *args: (0,) * len(shape))


# ----------------------- embeddings + LayerNorm kernel ---------------------- #

def _embed_ln_kernel(we_ref, pe_ref, te_ref, g_ref, b_ref, out_ref, *, B, S):
    D = we_ref.shape[-1]
    we = we_ref[...].astype(jnp.float32).reshape(B, S, D)      # (B, S, D)
    pe = pe_ref[...].astype(jnp.float32)                       # (S, D) -> bcast over B
    te = te_ref[...].astype(jnp.float32)                       # (1, D) -> bcast
    x = we + pe + te
    y = _layernorm(x, g_ref[...], b_ref[...])
    out_ref[...] = y.reshape(B * S, D)


def embed_layernorm(we_flat, pos_emb_s, type_emb, gamma, beta, *, B, S):
    N, D = we_flat.shape
    kern = functools.partial(_embed_ln_kernel, B=B, S=S)
    return pl.pallas_call(
        kern,
        out_shape=jax.ShapeDtypeStruct((N, D), jnp.float32),
        grid=(1,),
        in_specs=[_full_spec((N, D)), _full_spec((S, D)), _full_spec((1, D)),
                  _full_spec((1, D)), _full_spec((1, D))],
        out_specs=_full_spec((N, D)),
        compiler_params=pltpu.CompilerParams(dimension_semantics=("arbitrary",)),
    )(we_flat, pos_emb_s, type_emb, gamma, beta)


# ----------------- fused self-attention + residual + LayerNorm -------------- #
# grid=(3,): step 0/1/2 compute the Q/K/V projection block (wqkv column tile is
# double-buffered by the pipeline); the last step runs the attention math,
# output projection, residual add and LayerNorm.

def _attn_kernel(x_ref, wqkv_ref, bqkv_ref, wo_ref, bo_ref, g_ref, b_ref,
                 maskb_ref, out_ref, qkv_ref, ctx_ref, *, B, S, heads, head_dim):
    k_step = pl.program_id(0)
    D = heads * head_dim
    N = B * S

    x = x_ref[...]                                             # (N, D) f32
    x_bf = x.astype(jnp.bfloat16)

    # Per-step projection: writes Q (step 0), K (step 1) or V (step 2).
    qkv_ref[k_step] = (
        jnp.dot(x_bf, wqkv_ref[...], preferred_element_type=jnp.float32)
        + bqkv_ref[...])

    @pl.when(k_step == pl.num_programs(0) - 1)
    def _():
        q2 = qkv_ref[0]                                        # (N, D) f32
        k2 = qkv_ref[1]
        v2 = qkv_ref[2]
        scale = 1.0 / math.sqrt(head_dim)
        mask3 = maskb_ref[...][:, None, :]                     # (B, 1, S), hoisted

        for h in range(heads):                                 # static unroll
            sl = slice(h * head_dim, (h + 1) * head_dim)
            qh = q2[:, sl].reshape(B, S, head_dim)
            kh = k2[:, sl].reshape(B, S, head_dim)
            vh = v2[:, sl].reshape(B, S, head_dim)

            s = jnp.einsum('bqd,bkd->bqk', qh, kh,
                           preferred_element_type=jnp.float32) * scale
            s = s + mask3                                      # additive mask bias
            m = jnp.max(s, axis=-1, keepdims=True)
            e = jnp.exp(s - m)
            denom = jnp.sum(e, axis=-1, keepdims=True)
            p = e * pl.reciprocal(denom, approx=True)
            ctxh = jnp.einsum('bqk,bkd->bqd', p, vh,
                              preferred_element_type=jnp.float32)
            ctx_ref[:, sl] = ctxh.reshape(N, head_dim)         # no concatenate

        attn = (jnp.dot(ctx_ref[...].astype(jnp.bfloat16), wo_ref[...],
                        preferred_element_type=jnp.float32) + bo_ref[...])
        out_ref[...] = _layernorm(x + attn, g_ref[...], b_ref[...])


def attention_block(x_flat, mask_bias, wqkv, bqkv, wo, bo, gamma, beta,
                    *, B, S, heads, head_dim):
    N, D = x_flat.shape
    assert wqkv.shape == (D, 3 * D)
    kern = functools.partial(_attn_kernel, B=B, S=S, heads=heads,
                             head_dim=head_dim)
    return pl.pallas_call(
        kern,
        out_shape=jax.ShapeDtypeStruct((N, D), jnp.float32),
        grid=(3,),
        in_specs=[
            pl.BlockSpec((N, D), lambda k: (0, 0)),            # x (resident)
            pl.BlockSpec((D, D), lambda k: (0, k)),            # wqkv column tile
            pl.BlockSpec((1, D), lambda k: (0, k)),            # bqkv tile
            pl.BlockSpec((D, D), lambda k: (0, 0)),            # wo (fetched once)
            pl.BlockSpec((1, D), lambda k: (0, 0)),            # bo
            pl.BlockSpec((1, D), lambda k: (0, 0)),            # gamma
            pl.BlockSpec((1, D), lambda k: (0, 0)),            # beta
            pl.BlockSpec((B, S), lambda k: (0, 0)),            # mask bias
        ],
        out_specs=pl.BlockSpec((N, D), lambda k: (0, 0)),
        scratch_shapes=[pltpu.VMEM((3, N, D), jnp.float32),    # Q/K/V
                        pltpu.VMEM((N, D), jnp.float32)],      # per-head context
        compiler_params=pltpu.CompilerParams(
            dimension_semantics=("arbitrary",),
            vmem_limit_bytes=32 * 1024 * 1024),
    )(x_flat, wqkv, bqkv, wo, bo, gamma, beta, mask_bias)


# --------------- FFN (tiled over intermediate) + residual + LN -------------- #
# Accumulates directly into the resident output block; LayerNorm in place at
# the last reduction step.

def _ffn_kernel(x_ref, w1_ref, b1_ref, w2_ref, b2_ref, g_ref, b_ref, out_ref):
    k = pl.program_id(0)

    @pl.when(k == 0)
    def _():
        out_ref[...] = x_ref[...] + b2_ref[...]                # residual + out bias

    x_bf = x_ref[...].astype(jnp.bfloat16)
    h = jnp.dot(x_bf, w1_ref[...],
                preferred_element_type=jnp.float32) + b1_ref[...]
    h = jax.nn.gelu(h, approximate=True)
    out_ref[...] += jnp.dot(h.astype(jnp.bfloat16), w2_ref[...],
                            preferred_element_type=jnp.float32)

    @pl.when(k == pl.num_programs(0) - 1)
    def _():
        out_ref[...] = _layernorm(out_ref[...], g_ref[...], b_ref[...])


def ffn_block(x_flat, w1, b1, w2, b2, gamma, beta, *, tile_i):
    N, D = x_flat.shape
    I = w1.shape[1]
    assert I % tile_i == 0
    return pl.pallas_call(
        _ffn_kernel,
        out_shape=jax.ShapeDtypeStruct((N, D), jnp.float32),
        grid=(I // tile_i,),
        in_specs=[
            pl.BlockSpec((N, D), lambda k: (0, 0)),
            pl.BlockSpec((D, tile_i), lambda k: (0, k)),       # w1 tile (bf16)
            pl.BlockSpec((1, tile_i), lambda k: (0, k)),
            pl.BlockSpec((tile_i, D), lambda k: (k, 0)),       # w2 tile (bf16)
            pl.BlockSpec((1, D), lambda k: (0, 0)),
            pl.BlockSpec((1, D), lambda k: (0, 0)),
            pl.BlockSpec((1, D), lambda k: (0, 0)),
        ],
        out_specs=pl.BlockSpec((N, D), lambda k: (0, 0)),
        compiler_params=pltpu.CompilerParams(
            dimension_semantics=("arbitrary",),
            vmem_limit_bytes=32 * 1024 * 1024),
    )(x_flat, w1, b1, w2, b2, gamma, beta)


# ------------------------ classifier head (MLP) kernel ----------------------- #
# Dims zero-padded to lane-friendly sizes (hidden 50->64, output 5->128);
# logits sliced to 5 outside.

def _classifier_kernel(cls_ref, w1_ref, b1_ref, w2_ref, b2_ref, out_ref):
    h = jnp.dot(cls_ref[...].astype(jnp.bfloat16), w1_ref[...],
                preferred_element_type=jnp.float32) + b1_ref[...]
    h = jnp.maximum(h, 0.0)                                    # ReLU
    out_ref[...] = jnp.dot(h.astype(jnp.bfloat16), w2_ref[...],
                           preferred_element_type=jnp.float32) + b2_ref[...]


def classifier_head(cls, w1, b1, w2, b2):
    B, D = cls.shape
    Hp = w1.shape[1]
    Op = w2.shape[1]
    return pl.pallas_call(
        _classifier_kernel,
        out_shape=jax.ShapeDtypeStruct((B, Op), jnp.float32),
        grid=(1,),
        in_specs=[_full_spec((B, D)), _full_spec((D, Hp)), _full_spec((1, Hp)),
                  _full_spec((Hp, Op)), _full_spec((1, Op))],
        out_specs=_full_spec((B, Op)),
        compiler_params=pltpu.CompilerParams(dimension_semantics=("arbitrary",)),
    )(cls, w1, b1, w2, b2)


# ------------------------------- forward pass -------------------------------- #

def bert_classifier_forward(params, input_ids, attention_mask):
    cfg = params["config"]
    B, S = input_ids.shape
    D = cfg["hidden"]

    # Embedding gather: XLA glue (dynamic vocab gather). Tables stored in bf16.
    we = jnp.take(params["word_emb"], input_ids.reshape(-1), axis=0)      # (N, D) bf16
    pos = params["pos_emb"][:S]                                           # (S, D) bf16
    mask_bias = (attention_mask.astype(jnp.float32) - 1.0) * 1e9          # (B, S)

    x = embed_layernorm(we, pos, params["type_emb"],
                        params["ln_emb_g"], params["ln_emb_b"], B=B, S=S)  # (N, D) f32

    for layer in params["layers"]:
        x = attention_block(x, mask_bias,
                            layer["wqkv"], layer["bqkv"], layer["wo"], layer["bo"],
                            layer["ln1_g"], layer["ln1_b"],
                            B=B, S=S, heads=cfg["heads"], head_dim=cfg["head_dim"])
        x = ffn_block(x, layer["w1"], layer["b1"], layer["w2"], layer["b2"],
                      layer["ln2_g"], layer["ln2_b"], tile_i=cfg["ffn_tile"])

    cls = x.reshape(B, S, D)[:, 0, :]                          # outputs[0][:, 0, :]
    logits_pad = classifier_head(cls, params["fc1_w"], params["fc1_b"],
                                 params["fc2_w"], params["fc2_b"])
    return logits_pad[:, :cfg["n_output"]]


# ------------------------------ parameter setup ------------------------------ #

def init_params(key, *, vocab, max_pos, hidden, heads, intermediate, n_layers,
                n_cls_hidden, n_output):
    head_dim = hidden // heads
    keys = iter(jax.random.split(key, 8 + 8 * n_layers))

    def normal(shape, std=0.02, dtype=jnp.bfloat16):
        return (jax.random.normal(next(keys), shape, jnp.float32) * std).astype(dtype)

    layers = []
    for _ in range(n_layers):
        layers.append({
            "wqkv": normal((hidden, 3 * hidden)),                 # bf16
            "bqkv": jnp.zeros((1, 3 * hidden), jnp.float32),
            "wo":   normal((hidden, hidden)),                     # bf16
            "bo":   jnp.zeros((1, hidden), jnp.float32),
            "ln1_g": jnp.ones((1, hidden), jnp.float32),
            "ln1_b": jnp.zeros((1, hidden), jnp.float32),
            "w1": normal((hidden, intermediate)),                 # bf16
            "b1": jnp.zeros((1, intermediate), jnp.float32),
            "w2": normal((intermediate, hidden)),                 # bf16
            "b2": jnp.zeros((1, hidden), jnp.float32),
            "ln2_g": jnp.ones((1, hidden), jnp.float32),
            "ln2_b": jnp.zeros((1, hidden), jnp.float32),
        })

    # Classifier head, zero-padded to lane-friendly sizes.
    h_pad, o_pad = 64, 128
    fc1_core = normal((hidden, n_cls_hidden), dtype=jnp.float32)
    fc1_w = jnp.zeros((hidden, h_pad), jnp.float32).at[:, :n_cls_hidden].set(fc1_core)
    fc2_core = normal((n_cls_hidden, n_output), dtype=jnp.float32)
    fc2_w = jnp.zeros((h_pad, o_pad), jnp.float32).at[:n_cls_hidden, :n_output].set(fc2_core)

    return {
        "config": {"hidden": hidden, "heads": heads, "head_dim": head_dim,
                   "ffn_tile": min(1024, intermediate), "n_output": n_output},
        "word_emb": normal((vocab, hidden)),                      # bf16
        "pos_emb": normal((max_pos, hidden)),                     # bf16
        "type_emb": normal((1, hidden)),                          # token_type_ids == 0
        "ln_emb_g": jnp.ones((1, hidden), jnp.float32),
        "ln_emb_b": jnp.zeros((1, hidden), jnp.float32),
        "layers": layers,
        "fc1_w": fc1_w.astype(jnp.bfloat16),
        "fc1_b": jnp.zeros((1, h_pad), jnp.float32),
        "fc2_w": fc2_w.astype(jnp.bfloat16),
        "fc2_b": jnp.zeros((1, o_pad), jnp.float32),
    }


if __name__ == "__main__":
    VOCAB, MAX_POS = 128, 64
    HIDDEN, HEADS, INTERMEDIATE = 768, 12, 3072   # BERT-base dims
    N_LAYERS = 2                                  # TODO(synk): real bert-base has 12
    N_CLS_HIDDEN, N_OUTPUT = 50, 5                # classifier: 768 -> 50 -> 5
    B, S = 2, 16

    key = jax.random.PRNGKey(0)
    pkey, ikey = jax.random.split(key)
    params = init_params(pkey, vocab=VOCAB, max_pos=MAX_POS, hidden=HIDDEN,
                         heads=HEADS, intermediate=INTERMEDIATE, n_layers=N_LAYERS,
                         n_cls_hidden=N_CLS_HIDDEN, n_output=N_OUTPUT)
    input_ids = jax.random.randint(ikey, (B, S), 0, VOCAB, dtype=jnp.int32)
    # last 4 tokens of every sequence are padding (exercise the mask path)
    attention_mask = jnp.concatenate(
        [jnp.ones((B, S - 4), jnp.int32), jnp.zeros((B, 4), jnp.int32)], axis=1)

    logits = bert_classifier_forward(params, input_ids, attention_mask)
    logits = jax.block_until_ready(logits)

    assert logits.shape == (B, N_OUTPUT), logits.shape
    assert bool(jnp.all(jnp.isfinite(logits)))
    print("KERNEL_OK")
</pallas_src>

<mosaic_0001>
module attributes {stable_mosaic.version = 11 : i64} {
  func.func @_embed_ln_kernel(%arg0: i32, %arg1: memref<32x768xbf16, #tpu.memory_space<vmem>>, %arg2: memref<16x768xbf16, #tpu.memory_space<vmem>>, %arg3: memref<1x768xbf16, #tpu.memory_space<vmem>>, %arg4: memref<1x768xf32, #tpu.memory_space<vmem>>, %arg5: memref<1x768xf32, #tpu.memory_space<vmem>>, %arg6: memref<32x768xf32, #tpu.memory_space<vmem>>) attributes {dimension_semantics = [#tpu.dimension_semantics<arbitrary>], iteration_bounds = array<i64: 1>, scalar_prefetch = 0 : i64, scratch_operands = 0 : i64, tpu.core_type = #tpu.core_type<tc>, window_params = [{pipeline_mode = #tpu.pipeline_mode<synchronous>, transform_indices = @transform_0, window_bounds = array<i64: 32, 768>}, {pipeline_mode = #tpu.pipeline_mode<synchronous>, transform_indices = @transform_1, window_bounds = array<i64: 16, 768>}, {pipeline_mode = #tpu.pipeline_mode<synchronous>, transform_indices = @transform_2, window_bounds = array<i64: 1, 768>}, {pipeline_mode = #tpu.pipeline_mode<synchronous>, transform_indices = @transform_3, window_bounds = array<i64: 1, 768>}, {pipeline_mode = #tpu.pipeline_mode<synchronous>, transform_indices = @transform_4, window_bounds = array<i64: 1, 768>}, {pipeline_mode = #tpu.pipeline_mode<synchronous>, transform_indices = @transform_5, window_bounds = array<i64: 32, 768>}]} {
    %c0 = arith.constant 0 : index
    %c0_0 = arith.constant 0 : index
    %0 = vector.load %arg1[%c0, %c0_0] : memref<32x768xbf16, #tpu.memory_space<vmem>>, vector<32x768xbf16>
    %1 = arith.extf %0 : vector<32x768xbf16> to vector<32x768xf32>
    %2 = vector.shape_cast %1 : vector<32x768xf32> to vector<2x16x768xf32>
    %c0_1 = arith.constant 0 : index
    %c0_2 = arith.constant 0 : index
    %3 = vector.load %arg2[%c0_1, %c0_2] : memref<16x768xbf16, #tpu.memory_space<vmem>>, vector<16x768xbf16>
    %4 = arith.extf %3 : vector<16x768xbf16> to vector<16x768xf32>
    %c0_3 = arith.constant 0 : index
    %c0_4 = arith.constant 0 : index
    %5 = vector.load %arg3[%c0_3, %c0_4] : memref<1x768xbf16, #tpu.memory_space<vmem>>, vector<1x768xbf16>
    %6 = arith.extf %5 : vector<1x768xbf16> to vector<1x768xf32>
    %7 = vector.shape_cast %4 : vector<16x768xf32> to vector<1x16x768xf32>
    %8 = vector.broadcast %7 : vector<1x16x768xf32> to vector<2x16x768xf32>
    %9 = arith.addf %2, %8 : vector<2x16x768xf32>
    %10 = vector.shape_cast %6 : vector<1x768xf32> to vector<1x1x768xf32>
    %11 = vector.broadcast %10 : vector<1x1x768xf32> to vector<2x16x768xf32>
    %12 = arith.addf %9, %11 : vector<2x16x768xf32>
    %c0_5 = arith.constant 0 : index
    %c0_6 = arith.constant 0 : index
    %13 = vector.load %arg4[%c0_5, %c0_6] : memref<1x768xf32, #tpu.memory_space<vmem>>, vector<1x768xf32>
    %c0_7 = arith.constant 0 : index
    %c0_8 = arith.constant 0 : index
    %14 = vector.load %arg5[%c0_7, %c0_8] : memref<1x768xf32, #tpu.memory_space<vmem>>, vector<1x768xf32>
    %cst = arith.constant dense<0.000000e+00> : vector<2x16xf32>
    %15 = vector.multi_reduction <add>, %12, %cst [2] : vector<2x16x768xf32> to vector<2x16xf32>
    %16 = vector.shape_cast %15 : vector<2x16xf32> to vector<2x16x1xf32>
    %cst_9 = arith.constant 7.680000e+02 : f32
    %17 = vector.broadcast %cst_9 : f32 to vector<2x16x1xf32>
    %18 = arith.divf %16, %17 : vector<2x16x1xf32>
    %19 = vector.broadcast %18 : vector<2x16x1xf32> to vector<2x16x768xf32>
    %20 = arith.subf %12, %19 : vector<2x16x768xf32>
    %21 = arith.mulf %20, %20 : vector<2x16x768xf32>
    %cst_10 = arith.constant dense<0.000000e+00> : vector<2x16xf32>
    %22 = vector.multi_reduction <add>, %21, %cst_10 [2] : vector<2x16x768xf32> to vector<2x16xf32>
    %23 = vector.shape_cast %22 : vector<2x16xf32> to vector<2x16x1xf32>
    %cst_11 = arith.constant 7.680000e+02 : f32
    %24 = vector.broadcast %cst_11 : f32 to vector<2x16x1xf32>
    %25 = arith.divf %23, %24 : vector<2x16x1xf32>
    %cst_12 = arith.constant 9.99999996E-13 : f32
    %26 = vector.broadcast %cst_12 : f32 to vector<2x16x1xf32>
    %27 = arith.addf %25, %26 : vector<2x16x1xf32>
    %28 = math.rsqrt %27 : vector<2x16x1xf32>
    %29 = vector.broadcast %28 : vector<2x16x1xf32> to vector<2x16x768xf32>
    %30 = arith.mulf %20, %29 : vector<2x16x768xf32>
    %31 = vector.shape_cast %13 : vector<1x768xf32> to vector<1x1x768xf32>
    %32 = vector.broadcast %31 : vector<1x1x768xf32> to vector<2x16x768xf32>
    %33 = arith.mulf %30, %32 : vector<2x16x768xf32>
    %34 = vector.shape_cast %14 : vector<1x768xf32> to vector<1x1x768xf32>
    %35 = vector.broadcast %34 : vector<1x1x768xf32> to vector<2x16x768xf32>
    %36 = arith.addf %33, %35 : vector<2x16x768xf32>
    %37 = vector.shape_cast %36 : vector<2x16x768xf32> to vector<32x768xf32>
    %c0_13 = arith.constant 0 : index
    %c0_14 = arith.constant 0 : index
    %38 = vector.load %arg6[%c0_13, %c0_14] : memref<32x768xf32, #tpu.memory_space<vmem>>, vector<32x768xf32>
    tpu.vector_store %arg6[%c0_13, %c0_14], %37 {strides = array<i32>} : memref<32x768xf32, #tpu.memory_space<vmem>>, vector<32x768xf32>,
    return
  }
  func.func @transform_0(%arg0: i32) -> (i32, i32) {
    %c0_i32 = arith.constant 0 : i32
    %c0_i32_0 = arith.constant 0 : i32
    %c0_i32_1 = arith.constant 0 : i32
    return %c0_i32, %c0_i32_0 : i32, i32
  }
  func.func @transform_1(%arg0: i32) -> (i32, i32) {
    %c0_i32 = arith.constant 0 : i32
    %c0_i32_0 = arith.constant 0 : i32
    %c0_i32_1 = arith.constant 0 : i32
    return %c0_i32, %c0_i32_0 : i32, i32
  }
  func.func @transform_2(%arg0: i32) -> (i32, i32) {
    %c0_i32 = arith.constant 0 : i32
    %c0_i32_0 = arith.constant 0 : i32
    %c0_i32_1 = arith.constant 0 : i32
    return %c0_i32, %c0_i32_0 : i32, i32
  }
  func.func @transform_3(%arg0: i32) -> (i32, i32) {
    %c0_i32 = arith.constant 0 : i32
    %c0_i32_0 = arith.constant 0 : i32
    %c0_i32_1 = arith.constant 0 : i32
    return %c0_i32, %c0_i32_0 : i32, i32
  }
  func.func @transform_4(%arg0: i32) -> (i32, i32) {
    %c0_i32 = arith.constant 0 : i32
    %c0_i32_0 = arith.constant 0 : i32
    %c0_i32_1 = arith.constant 0 : i32
    return %c0_i32, %c0_i32_0 : i32, i32
  }
  func.func @transform_5(%arg0: i32) -> (i32, i32) {
    %c0_i32 = arith.constant 0 : i32
    %c0_i32_0 = arith.constant 0 : i32
    %c0_i32_1 = arith.constant 0 : i32
    return %c0_i32, %c0_i32_0 : i32, i32
  }
}

</mosaic_0001>

<bundles_post_ra>
// kernel: tpu_custom_call.1
= control target key start
LH: loop header
LB: loop body
LE: loop exit
PB: predicated region body
PF: predicated region fallthrough
CT: control target
= control target key end

     0   :  { %10 = vsyncpa [#allocation3], 0  ;;  %s1089_s0 = inlined_call_operand.hbm [shape: bf16[32,768], index: 0, kind: input, shape index: {}]   ;;  %s1090_s1 = inlined_call_operand.hbm [shape: bf16[16,768], index: 1, kind: input, shape index: {}]   ;;  %s1091_s2 = inlined_call_operand.vmem [shape: bf16[1,768], index: 2, kind: input, shape index: {}]   ;;  %s1092_s3 = inlined_call_operand.hbm [shape: f32[1,768], index: 3, kind: input, shape index: {}]   ;;  %s1093_s4 = inlined_call_operand.vmem [shape: f32[1,768], index: 4, kind: input, shape index: {}]   ;;  %s1094_s5 = inlined_call_operand.hbm [shape: f32[32,768], index: 5, kind: output, shape index: {}]  }
   0x1   :  { %11 = vsyncpa [#allocation6], 0 }
   0x2   :  { %12 = vsyncpa [#allocation4], 0  ;;  %s630_s18 = smov [#allocation5]   ;;  %s631_s20 = smov [#allocation2]  }
   0x3   :  { %s30_s19 = sshll.u32 %s630_s18, 4  ;;  %s18_s21 = sshll.u32 %s631_s20, 4  ;;  %s31_s19 = int_to_ptr.vmem [resolvable:$true] %s30_s19  ;;  %s668_s21 = int_to_ptr.vmem [resolvable:$true] %s18_s21 }
   0x4   :  { %s536_s24 = scalar_lea.hbm %s1090_s1, 768 }
   0x5   :  { %p537_p0 = scmp.ne.s32.totalorder %s1090_s1, %s536_s24  ;;  %p540_p1 = scmp.lt.u32.totalorder %s536_s24, %s1090_s1 }
   0x7   :  { %p542_p2 = pnand %p540_p1, %p537_p0 }
   0x9   :  { %545 = shalt.err (!%p542_p2)
}
   0xa   :  { %s546_s29 = scalar_lea.vmem %s31_s19, 768  ;;  %p551_p4 = scmp.lt.s32.totalorder %s31_s19, %s31_s19 }
   0xb   :  { %p547_p3 = scmp.ne.s32.totalorder %s31_s19, %s546_s29  ;;  %p552_p5 = scmp.lt.s32.totalorder %s546_s29, %s546_s29 }
   0xd   :  { %p553_p6 = por %p552_p5, %p551_p4 }
   0xf   :  { %p554_p7 = pnand %p553_p6, %p547_p3 }
  0x11   :  { %557 = shalt.err (!%p554_p7)
}
  0x12   :  { %s632_s30 = smov 384   ;;  %s633_s6 = smov 24  }
  0x13   :  { %36 = dma.hbm_to_vmem [thread:$0]  %s1090_s1, 768, %s31_s19, [#allocation6], %s632_s30, %s632_s30, %s633_s6  }
  0x14   :  { %s558_s11 = scalar_lea.hbm %s1089_s0, 1536 }
  0x15   :  { %p559_p8 = scmp.ne.s32.totalorder %s1089_s0, %s558_s11  ;;  %p562_p9 = scmp.lt.u32.totalorder %s558_s11, %s1089_s0 }
  0x17   :  { %p564_p10 = pnand %p562_p9, %p559_p8 }
  0x19   :  { %567 = shalt.err (!%p564_p10)
}
  0x1a   :  { %s568_s16 = scalar_lea.vmem %s668_s21, 1536  ;;  %p573_p12 = scmp.lt.s32.totalorder %s668_s21, %s668_s21 }
  0x1b   :  { %p569_p11 = scmp.ne.s32.totalorder %s668_s21, %s568_s16  ;;  %p574_p13 = scmp.lt.s32.totalorder %s568_s16, %s568_s16 }
  0x1d   :  { %p575_p0 = por %p574_p13, %p573_p12 }
  0x1f   :  { %p576_p1 = pnand %p575_p0, %p569_p11 }
  0x21   :  { %579 = shalt.err (!%p576_p1)
}
  0x22   :  { %24 = dma.hbm_to_vmem [thread:$0]  %s1089_s0, 1536, %s668_s21, [#allocation3], %s632_s30, %s632_s30, %s633_s6  }
  0x23   :  { %s634_s18 = smov [#allocation7]   ;;  %s580_s23 = scalar_lea.hbm %s1092_s3, 96 }
  0x24   :  { %s45_s19 = sshll.u32 %s634_s18, 4  ;;  %p581_p2 = scmp.ne.s32.totalorder %s1092_s3, %s580_s23  ;;  %s46_s19 = int_to_ptr.vmem [resolvable:$true] %s45_s19 }
  0x25   :  { %p584_p3 = scmp.lt.u32.totalorder %s580_s23, %s1092_s3 }
  0x27   :  { %p586_p4 = pnand %p584_p3, %p581_p2 }
  0x29   :  { %589 = shalt.err (!%p586_p4)
}
  0x2a   :  { %s590_s28 = scalar_lea.vmem %s46_s19, 96  ;;  %p595_p6 = scmp.lt.s32.totalorder %s46_s19, %s46_s19 }
  0x2b   :  { %p591_p5 = scmp.ne.s32.totalorder %s46_s19, %s590_s28  ;;  %p596_p7 = scmp.lt.s32.totalorder %s590_s28, %s590_s28 }
  0x2d   :  { %p597_p8 = por %p596_p7, %p595_p6 }
  0x2f   :  { %p598_p9 = pnand %p597_p8, %p591_p5 }
  0x31   :  { %601 = shalt.err (!%p598_p9)
}
  0x32   :  { %48 = dma.hbm_to_vmem [thread:$0]  %s1092_s3, 96, %s46_s19, [#allocation6]  }
  0x33   :  { %624 = dma.done.wait [#allocation3], 1536  }
  0x34   :  { %625 = vsyncadd [#allocation3], 4294965760 }
  0x35   :  { %626 = dma.done.wait [#allocation6], 864  }
  0x36   :  { %627 = vsyncadd [#allocation6], 4294966432  ;;  %v143_v0 = vlaneseq  ;;  %v66_v2 = vld [vmem:[#allocation2 + $0x30] sm:$0xff]  ;;  %v67_v3 = vld [vmem:[#allocation2 + $0x38] sm:$0xff] }
  0x37   :  { %v68_v5 = vld [vmem:[#allocation2 + $0x40] sm:$0xff]  ;;  %v84_v6 = vunpack.c.l.bf16 %v66_v2  ;;  %v85_v7 = vunpack.c.h.bf16 %v66_v2  ;;  %v86_v8 = vunpack.c.l.bf16 %v67_v3  ;;  %v97_v10 = vld [vmem:[#allocation5 + $0x8] sm:$0xff]  ;;  %v719_v12 = vld [vmem:[#allocation5 + $0x10] sm:$0xff]  ;;  %v87_v18 = vunpack.c.h.bf16 %v67_v3 }
  0x38   :  { %v711_v1 = vshrl.u32 %v143_v0, 7  ;;  %v96_v9 = vld [vmem:[#allocation5] sm:$0xff]  ;;  %v104_v19 = vunpack.c.l.bf16 %v97_v10  ;;  %v105_v20 = vunpack.c.h.bf16 %v97_v10  ;;  %v88_v21 = vunpack.c.l.bf16 %v68_v5  ;;  %v61_v49 = vld [vmem:[#allocation2 + $0x8] sm:$0xff]  ;;  %v62_v52 = vld [vmem:[#allocation2 + $0x10] sm:$0xff] }
  0x39   :  { %v102_v13 = vunpack.c.l.bf16 %v96_v9  ;;  %v103_v14 = vunpack.c.h.bf16 %v96_v9  ;;  %v114_v15 = vld [vmem:[%s1091_s2] sm:$0x3f]  ;;  %v89_v22 = vunpack.c.h.bf16 %v68_v5  ;;  %v106_v25 = vunpack.c.l.bf16 %v719_v12  ;;  %v69_v59 = vld [vmem:[#allocation2 + $0x48] sm:$0xff]  ;;  %v71_v9 = vld [vmem:[#allocation2 + $0x58] sm:$0xff] }
  0x3a   :  { %v714_v4 = vsub.s32 0, %v711_v1  ;;  %v717_v11 = vsub.s32 2, %v711_v1  ;;  %v725_v16 = vsub.s32 4, %v711_v1  ;;  %v157_v17 = vsub.s32 6, %v711_v1  ;;  %v60_v46 = vld [vmem:[#allocation2] sm:$0xff] }
  0x3b   :  { %v115_v23 = vunpack.c.l.bf16 %v114_v15  ;;  %v116_v24 = vunpack.c.h.bf16 %v114_v15  ;;  %v129_v26 = vadd.f32 %v102_v13, %v84_v6  ;;  %v130_v27 = vadd.f32 %v103_v14, %v85_v7  ;;  %v70_v6 = vld [vmem:[#allocation2 + $0x50] sm:$0xff] }
  0x3c   :  { %v131_v28 = vadd.f32 %v104_v19, %v86_v8  ;;  %v107_v33 = vunpack.c.h.bf16 %v719_v12  ;;  %v132_v34 = vadd.f32 %v105_v20, %v87_v18  ;;  %v133_v41 = vadd.f32 %v106_v25, %v88_v21  ;;  %v99_v18 = vld [vmem:[#allocation5 + $0x18] sm:$0xff] }
  0x3d   :  { %v146_v29 = vrot.slane %v115_v23, %v714_v4  ;;  %v150_v30 = vrot.slane %v115_v23, %v717_v11  ;;  %v154_v31 = vrot.slane %v115_v23, %v725_v16  ;;  %v158_v32 = vrot.slane %v115_v23, %v157_v17  ;;  %v101_v23 = vld [vmem:[#allocation5 + $0x28] sm:$0xff] }
  0x3e   :  { %v162_v35 = vrot.slane %v116_v24, %v714_v4  ;;  %v166_v36 = vrot.slane %v116_v24, %v717_v11  ;;  %v134_v47 = vadd.f32 %v107_v33, %v89_v22  ;;  %v72_v54 = vunpack.c.l.bf16 %v60_v46 }
  0x3f   :  { %v736_v37 = vrot.slane %v146_v29, %v714_v4  ;;  %v739_v38 = vrot.slane %v150_v30, %v714_v4  ;;  %v742_v39 = vrot.slane %v154_v31, %v714_v4  ;;  %v745_v40 = vrot.slane %v158_v32, %v714_v4  ;;  %v63_v32 = vld [vmem:[#allocation2 + $0x18] sm:$0xff] }
  0x40   :  { %v748_v42 = vrot.slane %v162_v35, %v714_v4  ;;  %v760_v48 = vrot.slane %v166_v36, %v714_v4  ;;  %v73_v56 = vunpack.c.h.bf16 %v60_v46  ;;  %v74_v57 = vunpack.c.l.bf16 %v61_v49 }
  0x41   :  { %v751_v43 = vadd.f32 %v736_v37, %v129_v26  ;;  %v754_v44 = vadd.f32 %v739_v38, %v130_v27  ;;  %v757_v45 = vadd.f32 %v742_v39, %v131_v28  ;;  %v763_v50 = vadd.f32 %v745_v40, %v132_v34 }
  0x42   :  { %v768_v53 = vadd.f32 %v748_v42, %v133_v41  ;;  %v75_v58 = vunpack.c.h.bf16 %v61_v49  ;;  %v772_v60 = vadd.f32 %v760_v48, %v134_v47  ;;  %v76_v61 = vunpack.c.l.bf16 %v62_v52 }
  0x43   :  { %v237_v51 = vadd.f32 %v754_v44, %v751_v43  ;;  %v77_v62 = vunpack.c.h.bf16 %v62_v52  ;;  %v117_v63 = vadd.f32 %v102_v13, %v72_v54  ;;  %v118_v2 = vadd.f32 %v103_v14, %v73_v56  ;;  %v100_v14 = vld [vmem:[#allocation5 + $0x20] sm:$0xff] }
  0x44   :  { %v119_v3 = vadd.f32 %v104_v19, %v74_v57  ;;  %v120_v5 = vadd.f32 %v105_v20, %v75_v58  ;;  %v121_v7 = vadd.f32 %v106_v25, %v76_v61  ;;  %v90_v10 = vunpack.c.l.bf16 %v69_v59 }
  0x45   :  { %v238_v55 = vadd.f32 %v237_v51, %v757_v45  ;;  %v776_v8 = vadd.f32 %v736_v37, %v117_v63  ;;  %v122_v15 = vadd.f32 %v107_v33, %v77_v62  ;;  %v780_v17 = vadd.f32 %v739_v38, %v118_v2  ;;  %v64_v51 = vld [vmem:[#allocation2 + $0x20] sm:$0xff] }
  0x46   :  { %v783_v13 = vadd.f32 %v742_v39, %v119_v3  ;;  %v786_v19 = vadd.f32 %v745_v40, %v120_v5  ;;  %v91_v20 = vunpack.c.h.bf16 %v69_v59  ;;  %v92_v21 = vunpack.c.l.bf16 %v70_v6 }
  0x47   :  { %v239_v0 = vadd.f32 %v238_v55, %v763_v50  ;;  %v93_v22 = vunpack.c.h.bf16 %v70_v6  ;;  %v790_v25 = vadd.f32 %v748_v42, %v121_v7  ;;  %v223_v26 = vadd.f32 %v780_v17, %v776_v8  ;;  %v65_v55 = vld [vmem:[#allocation2 + $0x28] sm:$0xff] }
  0x48   :  { %v94_v27 = vunpack.c.l.bf16 %v71_v9  ;;  %v108_v28 = vunpack.c.l.bf16 %v99_v18  ;;  %v109_v29 = vunpack.c.h.bf16 %v99_v18  ;;  %v110_v30 = vunpack.c.l.bf16 %v100_v14 }
  0x49   :  { %v240_v12 = vadd.f32 %v239_v0, %v768_v53  ;;  %v111_v31 = vunpack.c.h.bf16 %v100_v14  ;;  %v224_v33 = vadd.f32 %v223_v26, %v783_v13  ;;  %v95_v34 = vunpack.c.h.bf16 %v71_v9 }
  0x4a   :  { %v112_v35 = vunpack.c.l.bf16 %v101_v23  ;;  %v113_v36 = vunpack.c.h.bf16 %v101_v23  ;;  %v135_v41 = vadd.f32 %v108_v28, %v90_v10  ;;  %v136_v46 = vadd.f32 %v109_v29, %v91_v20 }
  0x4b   :  { %v241_v24 = vadd.f32 %v240_v12, %v772_v60  ;;  %v137_v47 = vadd.f32 %v110_v30, %v92_v21  ;;  %v138_v49 = vadd.f32 %v111_v31, %v93_v22  ;;  %v796_v52 = vadd.f32 %v760_v48, %v122_v15 }
  0x4c   :  { %v225_v54 = vadd.f32 %v224_v33, %v786_v19  ;;  %v78_v56 = vunpack.c.l.bf16 %v63_v32  ;;  %v79_v57 = vunpack.c.h.bf16 %v63_v32  ;;  %v139_v58 = vadd.f32 %v112_v35, %v94_v27 }
  0x4d   :  { %242 = vadd.xlane.f32.xlu1 %v241_v24  ;;  %v800_v59 = vadd.f32 %v736_v37, %v135_v41  ;;  %v803_v61 = vadd.f32 %v739_v38, %v136_v46  ;;  %v806_v62 = vadd.f32 %v742_v39, %v137_v47  ;;  %v140_v0 = vadd.f32 %v113_v36, %v95_v34 }
  0x4e   :  { %v226_v63 = vadd.f32 %v225_v54, %v790_v25  ;;  %v810_v2 = vadd.f32 %v745_v40, %v138_v49  ;;  %v80_v3 = vunpack.c.l.bf16 %v64_v51  ;;  %v81_v6 = vunpack.c.h.bf16 %v64_v51 }
  0x4f   :  { %v244_v5 = vadd.f32 %v803_v61, %v800_v59  ;;  %v82_v7 = vunpack.c.l.bf16 %v65_v55  ;;  %v83_v9 = vunpack.c.h.bf16 %v65_v55  ;;  %v123_v12 = vadd.f32 %v108_v28, %v78_v56 }
  0x50   :  { %v227_v10 = vadd.f32 %v226_v63, %v796_v52  ;;  %v124_v15 = vadd.f32 %v109_v29, %v79_v57  ;;  %v125_v18 = vadd.f32 %v110_v30, %v80_v3  ;;  %v816_v14 = vadd.f32 %v748_v42, %v139_v58 }
  0x51   :  { %v245_v20 = vadd.f32 %v244_v5, %v806_v62  ;;  %v126_v21 = vadd.f32 %v111_v31, %v81_v6  ;;  %v127_v22 = vadd.f32 %v112_v35, %v82_v7  ;;  %v820_v23 = vadd.f32 %v736_v37, %v123_v12 }
  0x52   :  { %228 = vadd.xlane.f32.xlu0 %v227_v10  ;;  %v823_v24 = vadd.f32 %v739_v38, %v124_v15  ;;  %v826_v26 = vadd.f32 %v742_v39, %v125_v18  ;;  %v829_v27 = vadd.f32 %v760_v48, %v140_v0  ;;  %v128_v29 = vadd.f32 %v113_v36, %v83_v9 }
  0x53   :  { %v246_v28 = vadd.f32 %v245_v20, %v810_v2  ;;  %v833_v30 = vadd.f32 %v745_v40, %v126_v21  ;;  %v839_v38 = vadd.f32 %v748_v42, %v127_v22 }
  0x54   :  { %v230_v31 = vadd.f32 %v823_v24, %v820_v23  ;;  %v844_v33 = vadd.f32 %v760_v48, %v128_v29 }
  0x55   :  { %v247_v37 = vadd.f32 %v246_v28, %v816_v14 }
  0x56   :  { %v231_v39 = vadd.f32 %v230_v31, %v826_v26 }
  0x57   :  { %v248_v32 = vadd.f32 %v247_v37, %v829_v27 }
  0x58   :  { %v232_v34 = vadd.f32 %v231_v39, %v833_v30 }
  0x59   :  { %249 = vadd.xlane.f32.xlu1 %v248_v32 }
  0x5a   :  { %v233_v40 = vadd.f32 %v232_v34, %v839_v38 }
  0x5c   :  { %v234_v35 = vadd.f32 %v233_v40, %v844_v33 }
  0x5e   :  { %235 = vadd.xlane.f32.xlu0 %v234_v35 }
  0xda   :  { %v243_v36 = vpop.xlane.xlu1 %242 }
  0xdb   :  { %v254_v41 = vmul.f32 0.0013020834, %v243_v36 }
  0xdd   :  { %v850_v42 = vsub.f32 %v751_v43, %v254_v41  ;;  %v853_v46 = vsub.f32 %v754_v44, %v254_v41  ;;  %v856_v47 = vsub.f32 %v757_v45, %v254_v41  ;;  %v863_v55 = vsub.f32 %v763_v50, %v254_v41 }
  0xde   :  { %v891_v6 = vsub.f32 %v768_v53, %v254_v41  ;;  %v910_v21 = vsub.f32 %v772_v60, %v254_v41 }
  0xdf   :  { %v292_v48 = vmul.f32 %v850_v42, %v850_v42  ;;  %v293_v49 = vmul.f32 %v853_v46, %v853_v46  ;;  %v229_v51 = vpop.xlane.xlu0 %228  ;;  %v294_v43 = vmul.f32 %v856_v47, %v856_v47  ;;  %v295_v0 = vmul.f32 %v863_v55, %v863_v55 }
  0xe0   :  { %v252_v54 = vmul.f32 0.0013020834, %v229_v51  ;;  %v296_v22 = vmul.f32 %v891_v6, %v891_v6  ;;  %v297_v36 = vmul.f32 %v910_v21, %v910_v21 }
  0xe1   :  { %v318_v56 = vadd.f32 %v293_v49, %v292_v48 }
  0xe2   :  { %v868_v44 = vsub.f32 %v776_v8, %v252_v54  ;;  %v871_v45 = vsub.f32 %v780_v17, %v252_v54  ;;  %v874_v57 = vsub.f32 %v783_v13, %v252_v54  ;;  %v877_v58 = vsub.f32 %v786_v19, %v252_v54 }
  0xe3   :  { %v319_v8 = vadd.f32 %v318_v56, %v294_v43  ;;  %v886_v17 = vsub.f32 %v790_v25, %v252_v54  ;;  %v894_v7 = vsub.f32 %v796_v52, %v252_v54 }
  0xe4   :  { %v280_v50 = vmul.f32 %v868_v44, %v868_v44  ;;  %v281_v63 = vmul.f32 %v871_v45, %v871_v45  ;;  %v282_v13 = vmul.f32 %v874_v57, %v874_v57  ;;  %v283_v9 = vmul.f32 %v877_v58, %v877_v58 }
  0xe5   :  { %v320_v12 = vadd.f32 %v319_v8, %v295_v0  ;;  %v284_v53 = vmul.f32 %v886_v17, %v886_v17 }
  0xe6   :  { %v250_v3 = vpop.xlane.xlu1 %249  ;;  %v304_v5 = vadd.f32 %v281_v63, %v280_v50 }
  0xe7   :  { %v255_v19 = vmul.f32 0.0013020834, %v250_v3  ;;  %v321_v31 = vadd.f32 %v320_v12, %v296_v22 }
  0xe8   :  { %v305_v10 = vadd.f32 %v304_v5, %v282_v13 }
  0xe9   :  { %v899_v15 = vsub.f32 %v800_v59, %v255_v19  ;;  %v902_v25 = vsub.f32 %v803_v61, %v255_v19  ;;  %v905_v18 = vsub.f32 %v806_v62, %v255_v19  ;;  %v285_v62 = vmul.f32 %v894_v7, %v894_v7 }
  0xea   :  { %v306_v20 = vadd.f32 %v305_v10, %v283_v9  ;;  %v921_v37 = vsub.f32 %v810_v2, %v255_v19  ;;  %v322_v48 = vadd.f32 %v321_v31, %v297_v36  ;;  %v956_v50 = vsub.f32 %v816_v14, %v255_v19 }
  0xeb   :  { %v236_v52 = vpop.xlane.xlu0 %235  ;;  %v298_v59 = vmul.f32 %v899_v15, %v899_v15  ;;  %v299_v61 = vmul.f32 %v902_v25, %v902_v25  ;;  %v300_v60 = vmul.f32 %v905_v18, %v905_v18  ;;  %v963_v13 = vsub.f32 %v829_v27, %v255_v19  ;;  %v221_v19 = vld [vmem:[#allocation7] sm:$0x3f] }
  0xec   :  { %v253_v28 = vmul.f32 0.0013020834, %v236_v52  ;;  %v307_v29 = vadd.f32 %v306_v20, %v284_v53  ;;  %v375_v27 = vsub.s32 1, %v711_v1  ;;  %v986_v36 = vrot.slane %v221_v19, %v725_v16 }
  0xed   :  { %v325_v39 = vadd.f32 %v299_v61, %v298_v59  ;;  %v303_v14 = vmul.f32 %v963_v13, %v963_v13  ;;  %v383_v61 = vsub.s32 3, %v711_v1 }
  0xee   :  { %v308_v32 = vadd.f32 %v307_v29, %v285_v62  ;;  %v926_v34 = vsub.f32 %v820_v23, %v253_v28  ;;  %v929_v40 = vsub.f32 %v823_v24, %v253_v28  ;;  %v932_v35 = vsub.f32 %v826_v26, %v253_v28  ;;  %v222_v62 = vld [vmem:[%s1093_s4] sm:$0x3f]  ;;  %s635_s4 = smov [#allocation8]  }
  0xef   :  { %v937_v2 = vsub.f32 %v833_v30, %v253_v28  ;;  %v301_v24 = vmul.f32 %v921_v37, %v921_v37  ;;  %v946_v26 = vsub.f32 %v839_v38, %v253_v28  ;;  %v326_v54 = vadd.f32 %v325_v39, %v300_v60  ;;  %s507_s6 = sshll.u32 %s635_s4, 4  ;;  %s508_s6 = int_to_ptr.vmem [resolvable:$true] %s507_s6 }
  0xf0   :  { %309 = vadd.xlane.f32.xlu0 %v308_v32  ;;  %v286_v41 = vmul.f32 %v926_v34, %v926_v34  ;;  %v287_v23 = vmul.f32 %v929_v40, %v929_v40  ;;  %v288_v49 = vmul.f32 %v932_v35, %v932_v35  ;;  %v951_v30 = vsub.f32 %v844_v33, %v253_v28  ;;  %s602_s7 = scalar_lea.vmem %s508_s6, 3072  ;;  %p607_p11 = scmp.lt.s32.totalorder %s508_s6, %s508_s6 }
  0xf1   :  { %v289_v43 = vmul.f32 %v937_v2, %v937_v2  ;;  %v290_v38 = vmul.f32 %v946_v26, %v946_v26  ;;  %v327_v0 = vadd.f32 %v326_v54, %v301_v24  ;;  %v302_v33 = vmul.f32 %v956_v50, %v956_v50  ;;  %p603_p10 = scmp.ne.s32.totalorder %s508_s6, %s602_s7  ;;  %p608_p12 = scmp.lt.s32.totalorder %s602_s7, %s602_s7 }
  0xf2   :  { %v311_v51 = vadd.f32 %v287_v23, %v286_v41  ;;  %v291_v8 = vmul.f32 %v951_v30, %v951_v30  ;;  %v391_v28 = vsub.s32 5, %v711_v1  ;;  %v976_v29 = vrot.slane %v221_v19, %v714_v4 }
  0xf3   :  { %v328_v9 = vadd.f32 %v327_v0, %v302_v33  ;;  %v978_v31 = vrot.slane %v221_v19, %v375_v27  ;;  %v981_v39 = vrot.slane %v221_v19, %v717_v11  ;;  %v983_v32 = vrot.slane %v221_v19, %v383_v61  ;;  %p609_p13 = por %p608_p12, %p607_p11 }
  0xf4   :  { %323 = vadd.xlane.f32.xlu0 %v322_v48  ;;  %v312_v56 = vadd.f32 %v311_v51, %v288_v49  ;;  %v988_v1 = vrot.slane %v221_v19, %v391_v28  ;;  %v991_v23 = vrot.slane %v222_v62, %v714_v4  ;;  %v993_v48 = vrot.slane %v222_v62, %v375_v27 }
  0xf5   :  { %v329_v10 = vadd.f32 %v328_v9, %v303_v14  ;;  %v996_v24 = vrot.slane %v222_v62, %v717_v11  ;;  %v998_v51 = vrot.slane %v222_v62, %v383_v61  ;;  %v1001_v54 = vrot.slane %v222_v62, %v725_v16  ;;  %p610_p0 = pnand %p609_p13, %p603_p10 }
  0xf6   :  { %v313_v63 = vadd.f32 %v312_v56, %v289_v43  ;;  %v1003_v43 = vrot.slane %v222_v62, %v391_v28 }
  0xf8   :  { %v314_v3 = vadd.f32 %v313_v63, %v290_v38 }
  0xfa   :  { %v315_v5 = vadd.f32 %v314_v3, %v291_v8 }
  0xfc   :  { %316 = vadd.xlane.f32.xlu1 %v315_v5 }
 0x100   :  { %330 = vadd.xlane.f32.xlu1 %v329_v10 }
 0x17d   :  { %v310_v12 = vpop.xlane.xlu0 %309 }
 0x17e   :  { %v332_v53 = vmul.f32 0.0013020834, %v310_v12 }
 0x180   :  { %v336_v20 = vadd.f32 1e-12, %v332_v53 }
 0x181   :  { %v324_v52 = vpop.xlane.xlu0 %323 }
 0x182   :  { %528 = vrsqrt.f32 %v336_v20  ;;  %v334_v22 = vmul.f32 0.0013020834, %v324_v52 }
 0x184   :  { %v338_v59 = vadd.f32 1e-12, %v334_v22 }
 0x186   :  { %530 = vrsqrt.f32 %v338_v59 }
 0x189   :  { %v317_v60 = vpop.xlane.xlu1 %316 }
 0x18a   :  { %v333_v41 = vmul.f32 0.0013020834, %v317_v60 }
 0x18c   :  { %v529_v49 = vpop.eup %528  ;;  %v337_v56 = vadd.f32 1e-12, %v333_v41 }
 0x18d   :  { %v344_v38 = vmul.f32 %v529_v49, %v868_v44  ;;  %v345_v63 = vmul.f32 %v529_v49, %v871_v45  ;;  %v346_v4 = vmul.f32 %v529_v49, %v874_v57  ;;  %v347_v0 = vmul.f32 %v529_v49, %v877_v58  ;;  %v331_v8 = vpop.xlane.xlu1 %330 }
 0x18e   :  { %v348_v11 = vmul.f32 %v529_v49, %v886_v17  ;;  %v349_v3 = vmul.f32 %v529_v49, %v894_v7  ;;  %532 = vrsqrt.f32 %v337_v56  ;;  %v335_v33 = vmul.f32 0.0013020834, %v331_v8 }
 0x18f   :  { %v399_v16 = vmul.f32 %v976_v29, %v344_v38  ;;  %v400_v5 = vmul.f32 %v978_v31, %v345_v63  ;;  %v401_v9 = vmul.f32 %v981_v39, %v346_v4  ;;  %v402_v44 = vmul.f32 %v983_v32, %v347_v0 }
 0x190   :  { %v531_v45 = vpop.eup %530  ;;  %v403_v57 = vmul.f32 %v986_v36, %v348_v11  ;;  %v404_v58 = vmul.f32 %v988_v1, %v349_v3  ;;  %v339_v14 = vadd.f32 1e-12, %v335_v33 }
 0x191   :  { %v454_v17 = vadd.f32 %v991_v23, %v399_v16  ;;  %v455_v7 = vadd.f32 %v993_v48, %v400_v5  ;;  %v456_v10 = vadd.f32 %v996_v24, %v401_v9  ;;  %v457_v12 = vadd.f32 %v998_v51, %v402_v44 }
 0x192   :  { %v458_v53 = vadd.f32 %v1001_v54, %v403_v57  ;;  %v459_v20 = vadd.f32 %v1003_v43, %v404_v58  ;;  %v356_v52 = vmul.f32 %v531_v45, %v850_v42  ;;  %v357_v22 = vmul.f32 %v531_v45, %v853_v46 }
 0x193   :  { %478 = vst [vmem:[#allocation8] sm:$0xff] %v454_v17  ;;  %479 = vst [vmem:[#allocation8 + $0x8] sm:$0xff] %v455_v7  ;;  %v358_v59 = vmul.f32 %v531_v45, %v856_v47  ;;  %v359_v27 = vmul.f32 %v531_v45, %v863_v55  ;;  %v360_v19 = vmul.f32 %v531_v45, %v891_v6  ;;  %534 = vrsqrt.f32 %v339_v14 }
 0x194   :  { %480 = vst [vmem:[#allocation8 + $0x10] sm:$0xff] %v456_v10  ;;  %481 = vst [vmem:[#allocation8 + $0x18] sm:$0xff] %v457_v12  ;;  %v361_v61 = vmul.f32 %v531_v45, %v910_v21  ;;  %v411_v28 = vmul.f32 %v976_v29, %v356_v52  ;;  %v412_v42 = vmul.f32 %v978_v31, %v357_v22 }
 0x195   :  { %482 = vst [vmem:[#allocation8 + $0x20] sm:$0xff] %v458_v53  ;;  %483 = vst [vmem:[#allocation8 + $0x28] sm:$0xff] %v459_v20  ;;  %v413_v46 = vmul.f32 %v981_v39, %v358_v59  ;;  %v414_v62 = vmul.f32 %v983_v32, %v359_v27  ;;  %v415_v60 = vmul.f32 %v986_v36, %v360_v19 }
 0x196   :  { %v416_v47 = vmul.f32 %v988_v1, %v361_v61  ;;  %v466_v55 = vadd.f32 %v991_v23, %v411_v28  ;;  %v467_v6 = vadd.f32 %v993_v48, %v412_v42 }
 0x197   :  { %v468_v21 = vadd.f32 %v996_v24, %v413_v46  ;;  %v469_v41 = vadd.f32 %v998_v51, %v414_v62  ;;  %v470_v49 = vadd.f32 %v1001_v54, %v415_v60 }
 0x198   :  { %v471_v56 = vadd.f32 %v1003_v43, %v416_v47  ;;  %v533_v38 = vpop.eup %532  ;;  %490 = vst [vmem:[#allocation8 + $0x60] sm:$0xff] %v466_v55  ;;  %491 = vst [vmem:[#allocation8 + $0x68] sm:$0xff] %v467_v6 }
 0x199   :  { %v350_v63 = vmul.f32 %v533_v38, %v926_v34  ;;  %v351_v4 = vmul.f32 %v533_v38, %v929_v40  ;;  %v352_v0 = vmul.f32 %v533_v38, %v932_v35  ;;  %v353_v8 = vmul.f32 %v533_v38, %v937_v2  ;;  %492 = vst [vmem:[#allocation8 + $0x70] sm:$0xff] %v468_v21 }
 0x19a   :  { %493 = vst [vmem:[#allocation8 + $0x78] sm:$0xff] %v469_v41  ;;  %494 = vst [vmem:[#allocation8 + $0x80] sm:$0xff] %v470_v49  ;;  %v354_v11 = vmul.f32 %v533_v38, %v946_v26  ;;  %v355_v3 = vmul.f32 %v533_v38, %v951_v30 }
 0x19b   :  { %495 = vst [vmem:[#allocation8 + $0x88] sm:$0xff] %v471_v56  ;;  %v405_v33 = vmul.f32 %v976_v29, %v350_v63  ;;  %v406_v16 = vmul.f32 %v978_v31, %v351_v4  ;;  %v407_v34 = vmul.f32 %v981_v39, %v352_v0  ;;  %v408_v40 = vmul.f32 %v983_v32, %v353_v8 }
 0x19c   :  { %v409_v35 = vmul.f32 %v986_v36, %v354_v11  ;;  %v410_v2 = vmul.f32 %v988_v1, %v355_v3 }
 0x19d   :  { %v460_v5 = vadd.f32 %v991_v23, %v405_v33  ;;  %v461_v9 = vadd.f32 %v993_v48, %v406_v16  ;;  %v462_v26 = vadd.f32 %v996_v24, %v407_v34  ;;  %v463_v30 = vadd.f32 %v998_v51, %v408_v40  ;;  %v535_v44 = vpop.eup %534 }
 0x19e   :  { %v464_v45 = vadd.f32 %v1001_v54, %v409_v35  ;;  %v465_v57 = vadd.f32 %v1003_v43, %v410_v2  ;;  %v362_v58 = vmul.f32 %v535_v44, %v899_v15  ;;  %v363_v14 = vmul.f32 %v535_v44, %v902_v25 }
 0x19f   :  { %484 = vst [vmem:[#allocation8 + $0x30] sm:$0xff] %v460_v5  ;;  %485 = vst [vmem:[#allocation8 + $0x38] sm:$0xff] %v461_v9  ;;  %v364_v17 = vmul.f32 %v535_v44, %v905_v18  ;;  %v365_v7 = vmul.f32 %v535_v44, %v921_v37  ;;  %v366_v10 = vmul.f32 %v535_v44, %v956_v50 }
 0x1a0   :  { %486 = vst [vmem:[#allocation8 + $0x40] sm:$0xff] %v462_v26  ;;  %487 = vst [vmem:[#allocation8 + $0x48] sm:$0xff] %v463_v30  ;;  %v367_v12 = vmul.f32 %v535_v44, %v963_v13  ;;  %v417_v53 = vmul.f32 %v976_v29, %v362_v58  ;;  %v418_v20 = vmul.f32 %v978_v31, %v363_v14 }
 0x1a1   :  { %488 = vst [vmem:[#allocation8 + $0x50] sm:$0xff] %v464_v45  ;;  %489 = vst [vmem:[#allocation8 + $0x58] sm:$0xff] %v465_v57  ;;  %v419_v15 = vmul.f32 %v981_v39, %v364_v17  ;;  %v420_v25 = vmul.f32 %v983_v32, %v365_v7  ;;  %v421_v18 = vmul.f32 %v986_v36, %v366_v10 }
 0x1a2   :  { %v422_v37 = vmul.f32 %v988_v1, %v367_v12  ;;  %v472_v52 = vadd.f32 %v991_v23, %v417_v53  ;;  %v473_v50 = vadd.f32 %v993_v48, %v418_v20 }
 0x1a3   :  { %v474_v13 = vadd.f32 %v996_v24, %v419_v15  ;;  %v475_v22 = vadd.f32 %v998_v51, %v420_v25  ;;  %v476_v29 = vadd.f32 %v1001_v54, %v421_v18 }
 0x1a4   :  { %v477_v31 = vadd.f32 %v1003_v43, %v422_v37  ;;  %496 = vst [vmem:[#allocation8 + $0x90] sm:$0xff] %v472_v52  ;;  %497 = vst [vmem:[#allocation8 + $0x98] sm:$0xff] %v473_v50 }
 0x1a5   :  { %498 = vst [vmem:[#allocation8 + $0xa0] sm:$0xff] %v474_v13  ;;  %499 = vst [vmem:[#allocation8 + $0xa8] sm:$0xff] %v475_v22 }
 0x1a6   :  { %500 = vst [vmem:[#allocation8 + $0xb0] sm:$0xff] %v476_v29  ;;  %501 = vst [vmem:[#allocation8 + $0xb8] sm:$0xff] %v477_v31 }
 0x1a7   :  { %613 = shalt.err (!%p610_p0)
}
 0x1a8   :  { %s614_s10 = scalar_lea.hbm %s1094_s5, 3072 }
 0x1a9   :  { %p615_p1 = scmp.ne.s32.totalorder %s1094_s5, %s614_s10  ;;  %p618_p2 = scmp.lt.u32.totalorder %s614_s10, %s1094_s5 }
 0x1ab   :  { %p620_p3 = pnand %p618_p2, %p615_p1 }
 0x1ad   :  { %623 = shalt.err (!%p620_p3)
}
 0x1ae   :  { %s636_s15 = smov 768   ;;  %s637_s16 = smov 48  }
 0x1af   :  { %513 = dma.vmem_to_hbm [thread:$0]  %s508_s6, 3072, %s1094_s5, [#allocation4], %s636_s15, %s636_s15, %s637_s16  }
 0x1b0   :  { %628 = dma.done.wait [#allocation4], 3072  }
 0x1b1   :  { %629 = vsyncadd [#allocation4], 4294964224 }
 0x1b2   :  { %517 = vsyncpa [#allocation3], 1 }
 0x1b3   :  { %518 = vsyncpa [#allocation6], 1 }
 0x1b4   :  { %519 = vsyncpa [#allocation4], 1 }

</bundles_post_ra>
